<compile_context>
chip_gen: v7x
topology: tpu7x:2x2x1
jax: 0.10.0
libtpu: 0.0.40
codegen_flags: <defaults>
</compile_context>

<pallas_src>
import functools

import jax
import jax.numpy as jnp
from jax.experimental import pallas as pl
from jax.experimental.pallas import tpu as pltpu

LN_EPS = 1e-5


def _round_up(n, m):
    return ((n + m - 1) // m) * m


def preln_ffn_kernel(x_ref, z_ref, g_ref, beta_ref,
                     w1_ref, b1_ref, w2_ref, b2_ref,
                     out_ref, acc_ref, norm_ref, *, mxu_dtype):
    h_idx = pl.program_id(1)

    # --- First hidden-dim step for this row tile: residual + LayerNorm ------
    @pl.when(h_idx == 0)
    def _init():
        zz = x_ref[...].astype(jnp.float32) + z_ref[...].astype(jnp.float32)
        # Single-pass LayerNorm over the feature (lane) axis: var = E[x^2]-E[x]^2.
        mean = jnp.mean(zz, axis=-1, keepdims=True)
        mean_sq = jnp.mean(zz * zz, axis=-1, keepdims=True)
        var = mean_sq - mean * mean
        norm = (zz - mean) * jax.lax.rsqrt(var + LN_EPS)
        norm = (norm * g_ref[...].astype(jnp.float32)
                + beta_ref[...].astype(jnp.float32))
        norm_ref[...] = norm.astype(norm_ref.dtype)
        # Accumulator starts with the second residual + final bias.
        acc_ref[...] = zz + b2_ref[...].astype(jnp.float32)

    # --- FFN over this hidden-dim slice (MXU, f32 accumulation) -------------
    h = jnp.dot(norm_ref[...], w1_ref[...].astype(mxu_dtype),
                preferred_element_type=jnp.float32)
    h = jnp.maximum(h + b1_ref[...].astype(jnp.float32), 0.0)
    acc_ref[...] += jnp.dot(h.astype(mxu_dtype), w2_ref[...].astype(mxu_dtype),
                            preferred_element_type=jnp.float32)

    # --- Last hidden-dim step: write the output tile -------------------------
    @pl.when(h_idx == pl.num_programs(1) - 1)
    def _finalize():
        out_ref[...] = acc_ref[...].astype(out_ref.dtype)


def preln_ffn(x, z, gamma, beta, w1, b1, w2, b2, *, tm=256, th=512):
    """x, z: (B, S, F). gamma/beta: (F,), w1: (F,4F), b1: (4F,), w2: (4F,F), b2: (F,)."""
    B, S, F = x.shape
    H = w1.shape[1]
    R = B * S
    dt = x.dtype                       # MXU operand dtype (bf16 in -> bf16 MXU)
    itm = jnp.dtype(dt).itemsize

    # Row tile: large by default, clamped to the (8-aligned) row count.
    tm = max(8, min(_round_up(tm, 8), _round_up(R, 8)))
    # Hidden tile: must be a lane-aligned divisor of H; otherwise fall back to H.
    if th % 128 != 0 or H % th != 0:
        th = H
    Rp = _round_up(R, tm)              # ragged tail -> zero-padded rows
    n_rows, n_h = Rp // tm, H // th

    x2 = x.reshape(R, F)
    z2 = z.reshape(R, F)
    if Rp != R:
        x2 = jnp.pad(x2, ((0, Rp - R), (0, 0)))
        z2 = jnp.pad(z2, ((0, Rp - R), (0, 0)))
    g2 = gamma.reshape(1, F)
    be2 = beta.reshape(1, F)
    b1_2 = b1.reshape(1, H)
    b2_2 = b2.reshape(1, F)

    # VMEM budget: double-buffered streamed tiles + single-buffered constants
    # + f32 accumulator / cached-norm scratch, with 2x headroom.
    est = (2 * 2 * tm * F * itm            # x, z
           + 2 * tm * F * itm              # out
           + 3 * F * itm                   # gamma, beta, b2 (Buffered(1))
           + 2 * (F * th + th) * itm       # W1, b1 slices
           + 2 * th * F * itm              # W2 slice
           + tm * F * 4 + tm * F * itm)    # acc + norm scratch
    vmem_limit = int(min(max(2 * est, 32 * 2 ** 20), 64 * 2 ** 20))

    const = dict(pipeline_mode=pl.Buffered(1))   # single-buffer constants
    out = pl.pallas_call(
        functools.partial(preln_ffn_kernel, mxu_dtype=dt),
        out_shape=jax.ShapeDtypeStruct((Rp, F), x.dtype),
        grid_spec=pltpu.PrefetchScalarGridSpec(
            num_scalar_prefetch=0,
            grid=(n_rows, n_h),
            in_specs=[
                pl.BlockSpec((tm, F), lambda i, h: (i, 0)),            # x rows
                pl.BlockSpec((tm, F), lambda i, h: (i, 0)),            # z rows
                pl.BlockSpec((1, F), lambda i, h: (0, 0), **const),    # gamma
                pl.BlockSpec((1, F), lambda i, h: (0, 0), **const),    # beta
                pl.BlockSpec((F, th), lambda i, h: (0, h)),            # W1 slice
                pl.BlockSpec((1, th), lambda i, h: (0, h)),            # b1 slice
                pl.BlockSpec((th, F), lambda i, h: (h, 0)),            # W2 slice
                pl.BlockSpec((1, F), lambda i, h: (0, 0), **const),    # b2
            ],
            out_specs=pl.BlockSpec((tm, F), lambda i, h: (i, 0)),
            scratch_shapes=[
                pltpu.VMEM((tm, F), jnp.float32),   # FFN accumulator
                pltpu.VMEM((tm, F), dt),            # cached LayerNorm output
            ],
        ),
        compiler_params=pltpu.CompilerParams(
            dimension_semantics=("parallel", "arbitrary"),
            vmem_limit_bytes=vmem_limit),
    )(x2, z2, g2, be2, w1, b1_2, w2, b2_2)
    return out[:R].reshape(B, S, F)


def preln_ffn_reference(x, z, gamma, beta, w1, b1, w2, b2):
    zz = x + z
    mean = jnp.mean(zz, axis=-1, keepdims=True)
    var = jnp.mean((zz - mean) ** 2, axis=-1, keepdims=True)
    norm = (zz - mean) * jax.lax.rsqrt(var + LN_EPS) * gamma + beta
    h = jnp.maximum(norm @ w1 + b1, 0.0)
    return zz + (h @ w2 + b2)


if __name__ == "__main__":
    B, S, F = 2, 12, 128      # featureSize = 128, hidden = 4*128 = 512
    H = 4 * F

    key = jax.random.PRNGKey(0)
    kx, kz, kg, kb, kw1, kb1, kw2, kb2 = jax.random.split(key, 8)

    x = jax.random.normal(kx, (B, S, F), jnp.float32)
    z = jax.random.normal(kz, (B, S, F), jnp.float32)

    # Deterministic parameter init (shapes follow nn.LayerNorm / nn.Linear).
    gamma = 1.0 + 0.1 * jax.random.normal(kg, (F,), jnp.float32)
    beta = 0.1 * jax.random.normal(kb, (F,), jnp.float32)
    w1 = jax.random.normal(kw1, (F, H), jnp.float32) / jnp.sqrt(F)
    b1 = 0.01 * jax.random.normal(kb1, (H,), jnp.float32)
    w2 = jax.random.normal(kw2, (H, F), jnp.float32) / jnp.sqrt(H)
    b2 = 0.01 * jax.random.normal(kb2, (F,), jnp.float32)

    # tm=16 / th=256 on this small shape exercises both the ragged-row padding
    # (R=24 -> 32) and the multi-step hidden-dim accumulation (2 h-steps).
    out = preln_ffn(x, z, gamma, beta, w1, b1, w2, b2, tm=16, th=256)
    out = jax.block_until_ready(out)

    ref = preln_ffn_reference(x, z, gamma, beta, w1, b1, w2, b2)
    assert out.shape == (B, S, F)
    assert jnp.allclose(out, ref, atol=5e-4, rtol=5e-4), "mismatch vs reference"

    print("KERNEL_OK")
</pallas_src>

<mosaic_0001>
module attributes {stable_mosaic.version = 11 : i64} {
  func.func @preln_ffn_kernel(%arg0: i32, %arg1: i32, %arg2: memref<16x128xf32, #tpu.memory_space<vmem>>, %arg3: memref<16x128xf32, #tpu.memory_space<vmem>>, %arg4: memref<1x128xf32, #tpu.memory_space<vmem>>, %arg5: memref<1x128xf32, #tpu.memory_space<vmem>>, %arg6: memref<128x256xf32, #tpu.memory_space<vmem>>, %arg7: memref<1x256xf32, #tpu.memory_space<vmem>>, %arg8: memref<256x128xf32, #tpu.memory_space<vmem>>, %arg9: memref<1x128xf32, #tpu.memory_space<vmem>>, %arg10: memref<16x128xf32, #tpu.memory_space<vmem>>, %arg11: memref<16x128xf32, #tpu.memory_space<vmem>>, %arg12: memref<16x128xf32, #tpu.memory_space<vmem>>) attributes {dimension_semantics = [#tpu.dimension_semantics<parallel>, #tpu.dimension_semantics<arbitrary>], iteration_bounds = array<i64: 2, 2>, scalar_prefetch = 0 : i64, scratch_operands = 2 : i64, tpu.core_type = #tpu.core_type<tc>, window_params = [{transform_indices = @transform_0, window_bounds = array<i64: 16, 128>}, {transform_indices = @transform_1, window_bounds = array<i64: 16, 128>}, {pipeline_mode = #tpu.pipeline_mode<synchronous>, transform_indices = @transform_2, window_bounds = array<i64: 1, 128>}, {pipeline_mode = #tpu.pipeline_mode<synchronous>, transform_indices = @transform_3, window_bounds = array<i64: 1, 128>}, {transform_indices = @transform_4, window_bounds = array<i64: 128, 256>}, {transform_indices = @transform_5, window_bounds = array<i64: 1, 256>}, {transform_indices = @transform_6, window_bounds = array<i64: 256, 128>}, {pipeline_mode = #tpu.pipeline_mode<synchronous>, transform_indices = @transform_7, window_bounds = array<i64: 1, 128>}, {transform_indices = @transform_8, window_bounds = array<i64: 16, 128>}]} {
    %c0_i32 = arith.constant 0 : i32
    %0 = arith.cmpi eq, %arg1, %c0_i32 : i32
    %1 = arith.extui %0 : i1 to i32
    %c0_i32_0 = arith.constant 0 : i32
    %2 = arith.cmpi ne, %1, %c0_i32_0 : i32
    scf.if %2 {
      %c0_15 = arith.constant 0 : index
      %c0_16 = arith.constant 0 : index
      %19 = vector.load %arg2[%c0_15, %c0_16] : memref<16x128xf32, #tpu.memory_space<vmem>>, vector<16x128xf32>
      %c0_17 = arith.constant 0 : index
      %c0_18 = arith.constant 0 : index
      %20 = vector.load %arg3[%c0_17, %c0_18] : memref<16x128xf32, #tpu.memory_space<vmem>>, vector<16x128xf32>
      %21 = arith.addf %19, %20 : vector<16x128xf32>
      %cst_19 = arith.constant dense<0.000000e+00> : vector<16xf32>
      %22 = vector.multi_reduction <add>, %21, %cst_19 [1] : vector<16x128xf32> to vector<16xf32>
      %23 = vector.shape_cast %22 : vector<16xf32> to vector<16x1xf32>
      %cst_20 = arith.constant 1.280000e+02 : f32
      %24 = vector.broadcast %cst_20 : f32 to vector<16x1xf32>
      %25 = arith.divf %23, %24 : vector<16x1xf32>
      %26 = arith.mulf %21, %21 : vector<16x128xf32>
      %cst_21 = arith.constant dense<0.000000e+00> : vector<16xf32>
      %27 = vector.multi_reduction <add>, %26, %cst_21 [1] : vector<16x128xf32> to vector<16xf32>
      %28 = vector.shape_cast %27 : vector<16xf32> to vector<16x1xf32>
      %cst_22 = arith.constant 1.280000e+02 : f32
      %29 = vector.broadcast %cst_22 : f32 to vector<16x1xf32>
      %30 = arith.divf %28, %29 : vector<16x1xf32>
      %31 = arith.mulf %25, %25 : vector<16x1xf32>
      %32 = arith.subf %30, %31 : vector<16x1xf32>
      %33 = vector.broadcast %25 : vector<16x1xf32> to vector<16x128xf32>
      %34 = arith.subf %21, %33 : vector<16x128xf32>
      %cst_23 = arith.constant 9.99999974E-6 : f32
      %35 = vector.broadcast %cst_23 : f32 to vector<16x1xf32>
      %36 = arith.addf %32, %35 : vector<16x1xf32>
      %37 = math.rsqrt %36 : vector<16x1xf32>
      %38 = vector.broadcast %37 : vector<16x1xf32> to vector<16x128xf32>
      %39 = arith.mulf %34, %38 : vector<16x128xf32>
      %c0_24 = arith.constant 0 : index
      %c0_25 = arith.constant 0 : index
      %40 = vector.load %arg4[%c0_24, %c0_25] : memref<1x128xf32, #tpu.memory_space<vmem>>, vector<1x128xf32>
      %41 = vector.broadcast %40 : vector<1x128xf32> to vector<16x128xf32>
      %42 = arith.mulf %39, %41 : vector<16x128xf32>
      %c0_26 = arith.constant 0 : index
      %c0_27 = arith.constant 0 : index
      %43 = vector.load %arg5[%c0_26, %c0_27] : memref<1x128xf32, #tpu.memory_space<vmem>>, vector<1x128xf32>
      %44 = vector.broadcast %43 : vector<1x128xf32> to vector<16x128xf32>
      %45 = arith.addf %42, %44 : vector<16x128xf32>
      %c0_28 = arith.constant 0 : index
      %c0_29 = arith.constant 0 : index
      %46 = vector.load %arg12[%c0_28, %c0_29] : memref<16x128xf32, #tpu.memory_space<vmem>>, vector<16x128xf32>
      tpu.vector_store %arg12[%c0_28, %c0_29], %45 {strides = array<i32>} : memref<16x128xf32, #tpu.memory_space<vmem>>, vector<16x128xf32>,
      %c0_30 = arith.constant 0 : index
      %c0_31 = arith.constant 0 : index
      %47 = vector.load %arg9[%c0_30, %c0_31] : memref<1x128xf32, #tpu.memory_space<vmem>>, vector<1x128xf32>
      %48 = vector.broadcast %47 : vector<1x128xf32> to vector<16x128xf32>
      %49 = arith.addf %21, %48 : vector<16x128xf32>
      %c0_32 = arith.constant 0 : index
      %c0_33 = arith.constant 0 : index
      %50 = vector.load %arg11[%c0_32, %c0_33] : memref<16x128xf32, #tpu.memory_space<vmem>>, vector<16x128xf32>
      tpu.vector_store %arg11[%c0_32, %c0_33], %49 {strides = array<i32>} : memref<16x128xf32, #tpu.memory_space<vmem>>, vector<16x128xf32>,
    } else {
    }
    %c0 = arith.constant 0 : index
    %c0_1 = arith.constant 0 : index
    %3 = vector.load %arg12[%c0, %c0_1] : memref<16x128xf32, #tpu.memory_space<vmem>>, vector<16x128xf32>
    %c0_2 = arith.constant 0 : index
    %c0_3 = arith.constant 0 : index
    %4 = vector.load %arg6[%c0_2, %c0_3] : memref<128x256xf32, #tpu.memory_space<vmem>>, vector<128x256xf32>
    %cst = arith.constant dense<0.000000e+00> : vector<16x256xf32>
    %5 = tpu.matmul %3, %4, %cst {dimension_numbers = #tpu.dot_dimension_numbers<[1], [0], [0], [1], [0, 0, 1, 1], [], []>} : vector<16x128xf32>, vector<128x256xf32>, vector<16x256xf32> -> vector<16x256xf32>
    %c0_4 = arith.constant 0 : index
    %c0_5 = arith.constant 0 : index
    %6 = vector.load %arg7[%c0_4, %c0_5] : memref<1x256xf32, #tpu.memory_space<vmem>>, vector<1x256xf32>
    %7 = vector.broadcast %6 : vector<1x256xf32> to vector<16x256xf32>
    %8 = arith.addf %5, %7 : vector<16x256xf32>
    %cst_6 = arith.constant 0.000000e+00 : f32
    %9 = vector.broadcast %cst_6 : f32 to vector<16x256xf32>
    %10 = arith.maximumf %8, %9 : vector<16x256xf32>
    %c0_7 = arith.constant 0 : index
    %c0_8 = arith.constant 0 : index
    %11 = vector.load %arg11[%c0_7, %c0_8] : memref<16x128xf32, #tpu.memory_space<vmem>>, vector<16x128xf32>
    %c0_9 = arith.constant 0 : index
    %c0_10 = arith.constant 0 : index
    %12 = vector.load %arg8[%c0_9, %c0_10] : memref<256x128xf32, #tpu.memory_space<vmem>>, vector<256x128xf32>
    %cst_11 = arith.constant dense<0.000000e+00> : vector<16x128xf32>
    %13 = tpu.matmul %10, %12, %cst_11 {dimension_numbers = #tpu.dot_dimension_numbers<[1], [0], [0], [1], [0, 0, 1, 1], [], []>} : vector<16x256xf32>, vector<256x128xf32>, vector<16x128xf32> -> vector<16x128xf32>
    %14 = arith.addf %11, %13 : vector<16x128xf32>
    %c0_12 = arith.constant 0 : index
    %c0_13 = arith.constant 0 : index
    %15 = vector.load %arg11[%c0_12, %c0_13] : memref<16x128xf32, #tpu.memory_space<vmem>>, vector<16x128xf32>
    tpu.vector_store %arg11[%c0_12, %c0_13], %14 {strides = array<i32>} : memref<16x128xf32, #tpu.memory_space<vmem>>, vector<16x128xf32>,
    %c1_i32 = arith.constant 1 : i32
    %16 = arith.cmpi eq, %arg1, %c1_i32 : i32
    %17 = arith.extui %16 : i1 to i32
    %c0_i32_14 = arith.constant 0 : i32
    %18 = arith.cmpi ne, %17, %c0_i32_14 : i32
    scf.if %18 {
      %c0_15 = arith.constant 0 : index
      %c0_16 = arith.constant 0 : index
      %19 = vector.load %arg11[%c0_15, %c0_16] : memref<16x128xf32, #tpu.memory_space<vmem>>, vector<16x128xf32>
      %c0_17 = arith.constant 0 : index
      %c0_18 = arith.constant 0 : index
      %20 = vector.load %arg10[%c0_17, %c0_18] : memref<16x128xf32, #tpu.memory_space<vmem>>, vector<16x128xf32>
      tpu.vector_store %arg10[%c0_17, %c0_18], %19 {strides = array<i32>} : memref<16x128xf32, #tpu.memory_space<vmem>>, vector<16x128xf32>,
    } else {
    }
    return
  }
  func.func @transform_0(%arg0: i32, %arg1: i32) -> (i32, i32) {
    %c0_i32 = arith.constant 0 : i32
    %c0_i32_0 = arith.constant 0 : i32
    return %arg0, %c0_i32 : i32, i32
  }
  func.func @transform_1(%arg0: i32, %arg1: i32) -> (i32, i32) {
    %c0_i32 = arith.constant 0 : i32
    %c0_i32_0 = arith.constant 0 : i32
    return %arg0, %c0_i32 : i32, i32
  }
  func.func @transform_2(%arg0: i32, %arg1: i32) -> (i32, i32) {
    %c0_i32 = arith.constant 0 : i32
    %c0_i32_0 = arith.constant 0 : i32
    %c0_i32_1 = arith.constant 0 : i32
    return %c0_i32, %c0_i32_0 : i32, i32
  }
  func.func @transform_3(%arg0: i32, %arg1: i32) -> (i32, i32) {
    %c0_i32 = arith.constant 0 : i32
    %c0_i32_0 = arith.constant 0 : i32
    %c0_i32_1 = arith.constant 0 : i32
    return %c0_i32, %c0_i32_0 : i32, i32
  }
  func.func @transform_4(%arg0: i32, %arg1: i32) -> (i32, i32) {
    %c0_i32 = arith.constant 0 : i32
    %c0_i32_0 = arith.constant 0 : i32
    return %c0_i32, %arg1 : i32, i32
  }
  func.func @transform_5(%arg0: i32, %arg1: i32) -> (i32, i32) {
    %c0_i32 = arith.constant 0 : i32
    %c0_i32_0 = arith.constant 0 : i32
    return %c0_i32, %arg1 : i32, i32
  }
  func.func @transform_6(%arg0: i32, %arg1: i32) -> (i32, i32) {
    %c0_i32 = arith.constant 0 : i32
    %c0_i32_0 = arith.constant 0 : i32
    return %arg1, %c0_i32 : i32, i32
  }
  func.func @transform_7(%arg0: i32, %arg1: i32) -> (i32, i32) {
    %c0_i32 = arith.constant 0 : i32
    %c0_i32_0 = arith.constant 0 : i32
    %c0_i32_1 = arith.constant 0 : i32
    return %c0_i32, %c0_i32_0 : i32, i32
  }
  func.func @transform_8(%arg0: i32, %arg1: i32) -> (i32, i32) {
    %c0_i32 = arith.constant 0 : i32
    %c0_i32_0 = arith.constant 0 : i32
    return %arg0, %c0_i32 : i32, i32
  }
}

</mosaic_0001>

<bundles_post_ra>
// kernel: tpu_custom_call.1
= control target key start
LH: loop header
LB: loop body
LE: loop exit
PB: predicated region body
PF: predicated region fallthrough
CT: control target
= control target key end

     0   :  { %s2067_s0 = inlined_call_operand.hbm [shape: f32[32,128], index: 0, kind: input, shape index: {}]   ;;  %s2068_s1 = inlined_call_operand.hbm [shape: f32[32,128], index: 1, kind: input, shape index: {}]   ;;  %s2069_s2 = inlined_call_operand.vmem [shape: f32[1,128], index: 2, kind: input, shape index: {}]   ;;  %s2070_s3 = inlined_call_operand.vmem [shape: f32[1,128], index: 3, kind: input, shape index: {}]   ;;  %s2071_s4 = inlined_call_operand.hbm [shape: f32[128,512], index: 4, kind: input, shape index: {}]   ;;  %s2072_s5 = inlined_call_operand.vmem [shape: f32[1,512], index: 5, kind: input, shape index: {}]   ;;  %s2073_s6 = inlined_call_operand.hbm [shape: f32[512,128], index: 6, kind: input, shape index: {}]   ;;  %s2074_s7 = inlined_call_operand.vmem [shape: f32[1,128], index: 7, kind: input, shape index: {}]   ;;  %s2075_s8 = inlined_call_operand.hbm [shape: f32[32,128], index: 8, kind: output, shape index: {}]  }
   0x1   :  { %2098 = sst [smem:[#allocation29_spill]] %s2067_s0 }
   0x2   :  { %2099 = sst [smem:[#allocation30_spill]] %s2068_s1 }
   0x3   :  { %2100 = sst [smem:[#allocation31_spill]] %s2069_s2 }
   0x4   :  { %2101 = sst [smem:[#allocation32_spill]] %s2070_s3 }
   0x5   :  { %2102 = sst [smem:[#allocation33_spill]] %s2071_s4 }
   0x6   :  { %2103 = sst [smem:[#allocation34_spill]] %s2075_s8 }
   0x7   :  { %13 = vsyncpa [#allocation5], 0 }
   0x8   :  { %15 = vsyncpa [#allocation5 + $0x1], 0 }
   0x9   :  { %16 = vsyncpa [#allocation8], 0 }
   0xa   :  { %18 = vsyncpa [#allocation8 + $0x1], 0 }
   0xb   :  { %19 = vsyncpa [#allocation11], 0 }
   0xc   :  { %21 = vsyncpa [#allocation11 + $0x1], 0 }
   0xd   :  { %22 = vsyncpa [#allocation6], 0 }
   0xe   :  { %24 = vsyncpa [#allocation6 + $0x1], 0  ;;  %s1549_s27 = smov 0   ;;  %s1551_s28 = smov 0  }
   0xf   :  { %s1553_s29 = smov 0   ;;  %s1555_s30 = smov 0  }
  0x10   :  { %s1557_s9 = smov 0   ;;  %s1559_s10 = smov 0  }
  0x11   :  { %s1561_s11 = smov 0   ;;  %s1563_s12 = smov 0  }
  0x12   :  { %s1565_s13 = smov 0   ;;  %s1567_s14 = smov 0  }
  0x13   :  { %s1569_s15 = smov 0  }
  0x14 LB: > { %2104 = sst [smem:[#allocation18_spill]] %s1461_s30  ;;  %s1605_s16 = sadd.s32 4294967295, %s1489_s15   ;;  %s1489_s15 = sphi %s1569_s15, %s30_s15   ;;  %s1485_s14 = sphi %s1567_s14, %s2151_s14   ;;  %s1481_s13 = sphi %s1565_s13, %s2159_s13   ;;  %s1477_s12 = sphi %s1563_s12, %s2149_s12   ;;  %s1473_s11 = sphi %s1561_s11, %s2158_s11   ;;  %s1469_s10 = sphi %s1559_s10, %s2157_s10   ;;  %s1465_s9 = sphi %s1557_s9, %s2156_s9   ;;  %s1461_s30 = sphi %s1555_s30, %s2155_s30   ;;  %s1457_s29 = sphi %s1553_s29, %s2154_s29   ;;  %s1453_s28 = sphi %s1551_s28, %s2153_s28   ;;  %s1449_s27 = sphi %s1549_s27, %s2152_s27  }
  0x15   : > { %2105 = sst [smem:[#allocation19_spill]] %s1469_s10  ;;  %s967_s17 = sadd.s32 4294967294, %s1489_s15  }
  0x16   : > { %2106 = sst [smem:[#allocation20_spill]] %s1477_s12  ;;  %s39_s18 = sadd.s32 1, %s1481_s13 }
  0x17   : > { %2107 = sst [smem:[#allocation21_spill]] %s1485_s14  ;;  %s42_s19 = sadd.s32 1, %s1485_s14 }
  0x18   : > { %2108 = sst [smem:[#allocation22_spill]] %s1489_s15  ;;  %p40_p0 = scmp.ge.s32.totalorder %s39_s18, 2 }
  0x19   : > { %s49_s20 = sadd.s32 1, %s1469_s10  ;;  %p56_p1 = scmp.ne.s32.totalorder %s1469_s10, %s1465_s9 }
  0x1a   : > { %p57_p2 = scmp.eq.s32.totalorder %s1489_s15, 0  ;;  %s2161_s18 = smov (%p40_p0, %s39_s18), 0 }
  0x1b   : > { %2109 = sst [smem:[#allocation23_spill]] %s2161_s18  ;;  %s2163_s19 = smov (!%p40_p0, %s42_s19), %s1485_s14 }
  0x1c   : > { %p1622_p3 = por %p57_p2, %p56_p1  ;;  %p2078_p4 = scmp.ne.s32.totalorder %s1465_s9, %s1461_s30 }
  0x1d   : > { %p44_p5 = scmp.ge.s32.totalorder %s2163_s19, 2  ;;  %p63_p6 = scmp.eq.s32.totalorder %s1605_s16, 0 }
  0x1e   : > { %s140_s22 = ssub.s32 %s1481_s13, %s2161_s18  ;;  %s143_s23 = sadd.s32 1, %s1457_s29 }
  0x1f   : > { %s2165_s19 = smov (%p44_p5, %s2163_s19), 0  ;;  %p1639_p7 = por %p63_p6, %p2078_p4 }
  0x20   : > { %2111 = sst [smem:[#allocation24_spill]] %s2165_s19  ;;  %p141_p8 = scmp.eq.s32.totalorder %s140_s22, 0 }
  0x21   : > { %s2112_s24 = scalar_select %p1639_p7, 1, 0 }
  0x22   : > { %s46_s25 = ssub.s32 %s1485_s14, %s2165_s19  ;;  %p150_p9 = scmp.ne.s32.totalorder %s1457_s29, %s1453_s28 }
  0x23   : > { %p47_p10 = scmp.eq.s32.totalorder %s46_s25, 0  ;;  %p156_p11 = scmp.ne.s32.totalorder %s1453_s28, %s1449_s27 }
  0x24   : > { %s1650_s26 = scalar_select %p141_p8, %s1457_s29, %s143_s23  }
  0x25   : > { %s1653_s18 = scalar_select %p47_p10, %s1469_s10, %s49_s20  }
  0x26   : > { %2113 = sst [smem:[#allocation25_spill]] %s1650_s26  ;;  %p1657_p12 = por %p150_p9, %p57_p2 }
  0x27   : > { %2114 = sst [smem:[#allocation26_spill]] %s1653_s18  ;;  %p1663_p13 = por %p156_p11, %p63_p6 }
  0x28   : > { %p253_p0 = scmp.eq.s32.totalorder %s1605_s16, 3  ;;  %p259_p5 = scmp.eq.s32.totalorder %s967_s17, 3 }
  0x29   : > { %s2116_s22 = scalar_select %p1663_p13, 1, 0 }
  0x2a   : > { %p1133_p4 = scmp.lt.s32.totalorder %s1489_s15, 4  ;;  %p1672_p7 = por %p253_p0, %p56_p1 }
  0x2b   : > { %p2119_p8 = scmp.ne.s32.totalorder %s1465_s9, %s1461_s30  ;;  %s2084_s23 = sand.u32 1, %s1469_s10  }
  0x2c   : > { %s2117_s27 = scalar_select %p1672_p7, 1, 0 }
  0x2d   : > { %p1679_p10 = por %p259_p5, %p2119_p8  ;;  %s2086_s25 = sshll.u32 %s1485_s14, 8 }
  0x2e   : > { %2118 = sst [smem:[#allocation27_spill]] %s2117_s27  ;;  %s1687_s19 = sshll.u32 %s2084_s23, 4 }
  0x2f   : > { %s2120_s20 = scalar_select %p1679_p10, 1, 0 }
  0x30   : > { %p1691_p2 = pnand %p1133_p4, %p1622_p3  ;;  %s309_s18 = sand.u32 1, %s1489_s15  }
  0x31   : > { %2121 = sst [smem:[#allocation28_spill]] %s2120_s20  ;;  %s2123_s1 = sld [smem:[#allocation30_spill]] }
  0x32   : > { %s313_s23 = scalar_lea.vmem [#allocation7], %s1687_s19  ;;  %p1708_p1 = pnand %p1133_p4, %p1657_p12 }
  0x33   : > { %s320_s21 = sshll.u32 %s313_s23, 4  ;;  %s1712_s12 = scalar_lea.sflag [#allocation8], %s309_s18  ;;  %s1704_s21 = int_to_ptr.vmem [resolvable:$true] %s320_s21 }
  0x34   : > { %p1237_p6 = pneg %p1691_p2 }
  0x37   : > { %s1701_s27 = scalar_lea.hbm %s2123_s1, %s2086_s25  ;;  %s1240_s23 = scalar_lea.hbm %s2123_s1, 512 }
  0x38   : > { %s1235_s3 = scalar_lea.hbm %s1701_s27, 256  ;;  %p1241_p4 = scmp.lt.u32.totalorder %s1701_s27, %s2123_s1 }
  0x39   : > { %p1236_p3 = scmp.ne.s32.totalorder %s1701_s27, %s1235_s3  ;;  %p1242_p12 = scmp.lt.u32.totalorder %s1240_s23, %s1235_s3 }
  0x3a   : > { %p1244_p5 = scmp.lt.u32.totalorder %s1235_s3, %s1701_s27 }
  0x3b   : > { %p1238_p9 = pnand %p1237_p6, %p1236_p3  ;;  %p1243_p0 = por %p1242_p12, %p1241_p4 }
  0x3d   : > { %p1239_p11 = pneg %p1238_p9  ;;  %p1245_p8 = por %p1244_p5, %p1243_p0 }
  0x3f   : > { %p1246_p10 = pnand %p1245_p8, %p1239_p11 }
  0x41   : > { %1249 = shalt.err (!%p1246_p10)
}
  0x42   : > { %s1250_s18 = scalar_lea.vmem %s1704_s21, 256  ;;  %s1491_s30 = smov [#allocation7]  }
  0x43   : > { %p1251_p3 = scmp.ne.s32.totalorder %s1704_s21, %s1250_s18  ;;  %s1255_s26 = sshll.u32 %s1491_s30, 4  ;;  %s1256_s26 = int_to_ptr.vmem [resolvable:$false] %s1255_s26 }
  0x44   : > { %s1257_s25 = scalar_lea.vmem %s1256_s26, 512  ;;  %p1258_p13 = scmp.lt.s32.totalorder %s1704_s21, %s1256_s26 }
  0x45   : > { %p1253_p9 = pnand %p1251_p3, %p1237_p6  ;;  %p1259_p4 = scmp.lt.s32.totalorder %s1257_s25, %s1250_s18 }
  0x47   : > { %p1254_p7 = pneg %p1253_p9  ;;  %p1260_p12 = por %p1259_p4, %p1258_p13 }
  0x49   : > { %p1261_p0 = pnand %p1260_p12, %p1254_p7 }
  0x4b   : > { %1264 = shalt.err (!%p1261_p0)
}
  0x4c   : > { %s2089_s3 = smov 128   ;;  %s2091_s23 = smov 8  }
  0x4d   : > { %1122 = dma.hbm_to_vmem [thread:$0]  (!%p1691_p2), %s1701_s27, 256, %s1704_s21, %s1712_s12, %s2089_s3, %s2089_s3, %s2091_s23  }
  0x4e   : > { %p982_p7 = scmp.ge.s32.totalorder %s1489_s15, 1  ;;  %p378_p13 = scmp.lt.s32.totalorder %s1489_s15, 5 }
  0x4f   : > { %s2126_s18 = sshll.u32 %s1485_s14, 8  ;;  %s2127_s0 = sld [smem:[#allocation29_spill]] }
  0x50   : > { %p1745_p10 = pnand %p982_p7, %p378_p13  ;;  %s292_s1 = scalar_lea.vmem [#allocation4], %s1687_s19 }
  0x51   : > { %s299_s2 = sshll.u32 %s292_s1, 4  ;;  %s2096_s27 = sand.u32 1, %s1457_s29   ;;  %s1757_s2 = int_to_ptr.vmem [resolvable:$true] %s299_s2 }
  0x52   : > { %s2125_s8 = scalar_select %p1745_p10, 1, 0 }
  0x53   : > { %s2128_s21 = sand.u32 1, %s1469_s10  }
  0x54   : > { %s1762_s3 = scalar_lea.sflag [#allocation5], %s2128_s21 }
  0x55   : > { %s1754_s25 = scalar_lea.hbm %s2127_s0, %s2126_s18  ;;  %s1270_s26 = scalar_lea.hbm %s2127_s0, 512 }
  0x56   : > { %s1265_s23 = scalar_lea.hbm %s1754_s25, 256  ;;  %p1271_p3 = scmp.lt.u32.totalorder %s1754_s25, %s2127_s0 }
  0x57   : > { %p1266_p11 = scmp.ne.s32.totalorder %s1754_s25, %s1265_s23  ;;  %p1272_p9 = scmp.lt.u32.totalorder %s1270_s26, %s1265_s23 }
  0x58   : > { %p1274_p12 = scmp.lt.u32.totalorder %s1265_s23, %s1754_s25 }
  0x59   : > { %p1268_p5 = pnand %p1266_p11, %p1237_p6  ;;  %p1273_p4 = por %p1272_p9, %p1271_p3 }
  0x5b   : > { %p1269_p8 = pneg %p1268_p5  ;;  %p1275_p0 = por %p1274_p12, %p1273_p4 }
  0x5d   : > { %p1276_p7 = pnand %p1275_p0, %p1269_p8 }
  0x5f   : > { %1279 = shalt.err (!%p1276_p7)
}
  0x60   : > { %s1280_s1 = scalar_lea.vmem %s1757_s2, 256  ;;  %s1494_s19 = smov [#allocation4]  }
  0x61   : > { %p1281_p13 = scmp.ne.s32.totalorder %s1757_s2, %s1280_s1  ;;  %s1285_s21 = sshll.u32 %s1494_s19, 4  ;;  %s1286_s21 = int_to_ptr.vmem [resolvable:$false] %s1285_s21 }
  0x62   : > { %s1287_s14 = scalar_lea.vmem %s1286_s21, 512  ;;  %p1288_p10 = scmp.lt.s32.totalorder %s1757_s2, %s1286_s21 }
  0x63   : > { %p1283_p11 = pnand %p1281_p13, %p1237_p6  ;;  %p1289_p3 = scmp.lt.s32.totalorder %s1287_s14, %s1280_s1 }
  0x65   : > { %p1284_p5 = pneg %p1283_p11  ;;  %p1290_p9 = por %p1289_p3, %p1288_p10 }
  0x67   : > { %p1291_p4 = pnand %p1290_p9, %p1284_p5 }
  0x69   : > { %1294 = shalt.err (!%p1291_p4)
}
  0x6a   : > { %s2129_s15 = smov 8   ;;  %s2130_s23 = smov 128  }
  0x6b   : > { %1119 = dma.hbm_to_vmem [thread:$0]  (!%p1691_p2), %s1754_s25, 256, %s1757_s2, %s1762_s3, %s2130_s23, %s2130_s23, %s2129_s15  }
  0x6c   : > { %s1793_s18 = sshll.u32 %s2096_s27, 8  ;;  %s1001_s30 = sshll.u32 %s1481_s13, 8 }
  0x6d   : > { %s2131_s4 = sld [smem:[#allocation33_spill]]  ;;  %s334_s19 = scalar_lea.vmem [#allocation9], %s1793_s18 }
  0x6e   : > { %s341_s21 = sshll.u32 %s334_s19, 4  ;;  %p1297_p6 = pneg %p1708_p1  ;;  %s1802_s21 = int_to_ptr.vmem [resolvable:$true] %s341_s21 }
  0x73   : > { %s1799_s17 = scalar_lea.hbm %s2131_s4, %s1001_s30  ;;  %s1300_s25 = scalar_lea.hbm %s2131_s4, 8192 }
  0x74   : > { %s1295_s14 = scalar_lea.hbm %s1799_s17, 4096  ;;  %p1301_p12 = scmp.lt.u32.totalorder %s1799_s17, %s2131_s4 }
  0x75   : > { %p1296_p2 = scmp.ne.s32.totalorder %s1799_s17, %s1295_s14  ;;  %p1302_p0 = scmp.lt.u32.totalorder %s1300_s25, %s1295_s14 }
  0x76   : > { %p1304_p13 = scmp.lt.u32.totalorder %s1295_s14, %s1799_s17 }
  0x77   : > { %p1298_p10 = pnand %p1297_p6, %p1296_p2  ;;  %p1303_p7 = por %p1302_p0, %p1301_p12 }
  0x79   : > { %p1299_p8 = pneg %p1298_p10  ;;  %p1305_p11 = por %p1304_p13, %p1303_p7 }
  0x7b   : > { %p1306_p5 = pnand %p1305_p11, %p1299_p8 }
  0x7d   : > { %1309 = shalt.err (!%p1306_p5)
}
  0x7e   : > { %s1310_s1 = scalar_lea.vmem %s1802_s21, 4096  ;;  %s1495_s19 = smov [#allocation9]  }
  0x7f   : > { %p1311_p3 = scmp.ne.s32.totalorder %s1802_s21, %s1310_s1  ;;  %s1315_s2 = sshll.u32 %s1495_s19, 4  ;;  %s1316_s2 = int_to_ptr.vmem [resolvable:$false] %s1315_s2 }
  0x80   : > { %s1317_s3 = scalar_lea.vmem %s1316_s2, 8192  ;;  %p1318_p2 = scmp.lt.s32.totalorder %s1802_s21, %s1316_s2 }
  0x81   : > { %p1313_p9 = pnand %p1311_p3, %p1297_p6  ;;  %p1319_p10 = scmp.lt.s32.totalorder %s1317_s3, %s1310_s1 }
  0x83   : > { %p1314_p4 = pneg %p1313_p9  ;;  %p1320_p12 = por %p1319_p10, %p1318_p2 }
  0x85   : > { %p1321_p0 = pnand %p1320_p12, %p1314_p4 }
  0x87   : > { %1324 = shalt.err (!%p1321_p0)
}
  0x88   : > { %s1496_s14 = smov 512   ;;  %s1497_s25 = smov 256  }
  0x89   : > { %s1498_s30 = smov 16   ;;  %s1002_s26 = sshll.u32 %s1481_s13, 12 }
  0x8a   : > { %1125 = dma.hbm_to_vmem [thread:$0]  (!%p1708_p1), %s1799_s17, 4096, %s1802_s21, %s1712_s12, %s1496_s14, %s1497_s25, %s1498_s30  }
  0x8b   : > { %s1834_s1 = scalar_lea.hbm %s2073_s6, %s1002_s26  ;;  %s363_s3 = scalar_lea.vmem [#allocation10], %s1793_s18 }
  0x8c   : > { %s370_s27 = sshll.u32 %s363_s3, 4  ;;  %s2132_s0 = sand.u32 1, %s1457_s29   ;;  %s1837_s27 = int_to_ptr.vmem [resolvable:$true] %s370_s27 }
  0x8d   : > { %s1841_s4 = scalar_lea.sflag [#allocation11], %s2132_s0  ;;  %s1325_s10 = scalar_lea.hbm %s1834_s1, 4096 }
  0x8e   : > { %p1326_p8 = scmp.ne.s32.totalorder %s1834_s1, %s1325_s10  ;;  %s1330_s21 = scalar_lea.hbm %s2073_s6, 8192 }
  0x8f   : > { %p1331_p11 = scmp.lt.u32.totalorder %s1834_s1, %s2073_s6  ;;  %p1332_p5 = scmp.lt.u32.totalorder %s1330_s21, %s1325_s10 }
  0x90   : > { %p1328_p7 = pnand %p1326_p8, %p1297_p6  ;;  %p1334_p9 = scmp.lt.u32.totalorder %s1325_s10, %s1834_s1 }
  0x91   : > { %p1333_p3 = por %p1332_p5, %p1331_p11 }
  0x92   : > { %p1329_p13 = pneg %p1328_p7 }
  0x93   : > { %p1335_p4 = por %p1334_p9, %p1333_p3 }
  0x95   : > { %p1336_p2 = pnand %p1335_p4, %p1329_p13 }
  0x97   : > { %1339 = shalt.err (!%p1336_p2)
}
  0x98   : > { %s1340_s0 = scalar_lea.vmem %s1837_s27, 4096  ;;  %s1499_s18 = smov [#allocation10]  }
  0x99   : > { %p1341_p10 = scmp.ne.s32.totalorder %s1837_s27, %s1340_s0  ;;  %s1345_s30 = sshll.u32 %s1499_s18, 4  ;;  %s1346_s30 = int_to_ptr.vmem [resolvable:$false] %s1345_s30 }
  0x9a   : > { %s1347_s26 = scalar_lea.vmem %s1346_s30, 8192  ;;  %p1348_p8 = scmp.lt.s32.totalorder %s1837_s27, %s1346_s30 }
  0x9b   : > { %p1343_p12 = pnand %p1341_p10, %p1297_p6  ;;  %p1349_p7 = scmp.lt.s32.totalorder %s1347_s26, %s1340_s0 }
  0x9d   : > { %p1344_p0 = pneg %p1343_p12  ;;  %p1350_p11 = por %p1349_p7, %p1348_p8 }
  0x9f   : > { %p1351_p5 = pnand %p1350_p11, %p1344_p0 }
  0xa1   : > { %1354 = shalt.err (!%p1351_p5)
}
  0xa2   : > { %1128 = dma.hbm_to_vmem [thread:$0]  (!%p1708_p1), %s1834_s1, 4096, %s1837_s27, %s1841_s4, %s2130_s23, %s2130_s23, %s2129_s15  }
  0xa3   : > { %p2133_p6 = scmp.ne.s32.totalorder %s2125_s8, 0 }
  0xa4   : > { %s1873_s10 = sand.u32 (!%p2133_p6), 1, %s1465_s9   ;;  %p2134_p13 = scmp.ne.s32.totalorder (!%p2133_p6), %s2112_s24, 0 }
  0xa5   : > { %382 = sbr.rel (%p2133_p6) target bundleno = 872 (0x368), region = 52  ;;  %s1876_s19 = sshll.u32 (!%p2133_p6), %s1873_s10, 4 }
  0xa6   : > { %s385_s20 = scalar_lea.sflag (!%p2133_p6), [#allocation5], %s1873_s10  ;;  %s388_s2 = scalar_lea.vmem (!%p2133_p6), [#allocation4], %s1876_s19 }
  0xac   : > { %1428 = dma.done.wait (%p2134_p13), %s385_s20, 256  }
  0xad   : > { %1430 = vsyncadd (%p2134_p13), %s385_s20, 4294967040  ;;  %s393_s4 = sand.u32 1, %s1605_s16   ;;  %s397_s27 = scalar_lea.vmem [#allocation7], %s1876_s19 }
  0xae   : > { %s394_s8 = scalar_lea.sflag [#allocation8], %s393_s4 }
  0xaf   : > { %1432 = dma.done.wait (%p2134_p13), %s394_s8, 256  }
  0xb0   : > { %1434 = vsyncadd (%p2134_p13), %s394_s8, 4294967040  ;;  %s404_s15 = sand.u32 1, %s1453_s28   ;;  %p2135_p1 = scmp.ne.s32.totalorder %s2116_s22, 0 }
  0xb1   : > { %s985_s23 = sshll.u32 %s404_s15, 8 }
  0xb2   : > { %s1891_s1 = scalar_lea.vmem [#allocation9], %s985_s23 }
  0xb3   : > { %1436 = dma.done.wait (%p2135_p1), %s394_s8, 4096  }
  0xb4   : > { %1438 = vsyncadd (%p2135_p1), %s394_s8, 4294963200  ;;  %s412_s16 = scalar_lea.sflag [#allocation11], %s404_s15  ;;  %s1897_s3 = scalar_lea.vmem [#allocation10], %s985_s23 }
  0xb5   : > { %1440 = dma.done.wait (%p2135_p1), %s412_s16, 4096  }
  0xb6   : > { %1442 = vsyncadd (%p2135_p1), %s412_s16, 4294963200  ;;  %s988_s24 = sshll.u32 %s1473_s11, 1  ;;  %s1911_s14 = scalar_lea.vmem [#allocation12], %s1876_s19 }
  0xb7   : > { %p471_p3 = scmp.lt.s32.totalorder %s988_s24, 3  ;;  %p989_p9 = scmp.ne.s32.totalorder %s1473_s11, 0 }
  0xb8   : > { %v481_v0 = vld [vmem:[%s388_s2] sm:$0xff] (!%p989_p9)  ;;  %v482_v4 = vld [vmem:[%s388_s2 + $0x8] sm:$0xff] (!%p989_p9)  ;;  %s2136_s30 = sld [smem:[#allocation31_spill]] (!%p989_p9)  ;;  %s2137_s20 = sld [smem:[#allocation32_spill]] (!%p989_p9) }
  0xb9   : > { %s2167_s24 = smov (!%p471_p3, %s988_s24), 3  ;;  %480 = sbr.rel (%p989_p9) target bundleno = 361 (0x169), region = 72 }
  0xba   : > { %s473_s21 = scalar_lea.vmem %s2072_s5, %s2167_s24  ;;  %v483_v1 = vld [vmem:[%s397_s27] sm:$0xff] (!%p989_p9)  ;;  %v484_v5 = vld [vmem:[%s397_s27 + $0x8] sm:$0xff] (!%p989_p9) }
  0xbb   : > { %v992_v2 = vld [vmem:[%s2074_s7] ss:$0 sm:$0xff] (!%p989_p9)  ;;  %v485_v3 = vadd.f32 (!%p989_p9), %v483_v1, %v481_v0  ;;  %v486_v6 = vadd.f32 (!%p989_p9), %v484_v5, %v482_v4 }
  0xbd   : > { %487 = vadd.xlane.f32.xlu0 (!%p989_p9), %v485_v3  ;;  %v541_v7 = vadd.f32 (!%p989_p9), %v992_v2, %v485_v3  ;;  %v494_v8 = vmul.f32 (!%p989_p9), %v485_v3, %v485_v3  ;;  %v542_v9 = vadd.f32 (!%p989_p9), %v992_v2, %v486_v6  ;;  %v495_v10 = vmul.f32 (!%p989_p9), %v486_v6, %v486_v6 }
  0xbe   : > { %v990_v27 = vld [vmem:[%s2136_s30] ss:$0 sm:$0xff] (!%p989_p9) }
  0xbf   : > { %543 = vst [vmem:[#allocation2] sm:$0xff] (!%p989_p9), %v541_v7  ;;  %496 = vadd.xlane.f32.xlu1 (!%p989_p9), %v494_v8  ;;  %544 = vst [vmem:[#allocation2 + $0x8] sm:$0xff] (!%p989_p9), %v542_v9  ;;  %v991_v29 = vld [vmem:[%s2137_s20] ss:$0 sm:$0xff] (!%p989_p9) }
  0xc1   : > { %489 = vadd.xlane.f32.xlu0 %v486_v6 }
  0xc3   : > { %498 = vadd.xlane.f32.xlu1 %v495_v10 }
 0x14a   : > { %v488_v11 = vpop.xlane.xlu0 %487 }
 0x14b   : > { %v492_v12 = vmul.f32 0.0078125, %v488_v11 }
 0x14c   : > { %v497_v13 = vpop.xlane.xlu1 %496 }
 0x14d   : > { %v502_v14 = vmul.f32 %v492_v12, %v492_v12  ;;  %v500_v15 = vmul.f32 0.0078125, %v497_v13  ;;  %v506_v25 = vsub.f32 %v485_v3, %v492_v12 }
 0x14e   : > { %v490_v16 = vpop.xlane.xlu0 %489 }
 0x14f   : > { %v504_v17 = vsub.f32 %v500_v15, %v502_v14  ;;  %v493_v18 = vmul.f32 0.0078125, %v490_v16 }
 0x150   : > { %v499_v19 = vpop.xlane.xlu1 %498 }
 0x151   : > { %v508_v20 = vadd.f32 1e-05, %v504_v17  ;;  %v503_v21 = vmul.f32 %v493_v18, %v493_v18  ;;  %v501_v22 = vmul.f32 0.0078125, %v499_v19  ;;  %v507_v31 = vsub.f32 %v486_v6, %v493_v18 }
 0x153   : > { %1231 = vrsqrt.f32 %v508_v20  ;;  %v505_v23 = vsub.f32 %v501_v22, %v503_v21 }
 0x155   : > { %v509_v24 = vadd.f32 1e-05, %v505_v23 }
 0x157   : > { %1233 = vrsqrt.f32 %v509_v24 }
 0x15d   : > { %v1232_v26 = vpop.eup %1231 }
 0x15e   : > { %v512_v28 = vmul.f32 %v1232_v26, %v506_v25 }
 0x160   : > { %v521_v30 = vmul.f32 %v990_v27, %v512_v28 }
 0x161   : > { %v1234_v32 = vpop.eup %1233 }
 0x162   : > { %v530_v33 = vadd.f32 %v991_v29, %v521_v30  ;;  %v513_v34 = vmul.f32 %v1234_v32, %v507_v31 }
 0x164   : > { %532 = vst [vmem:[#allocation3] sm:$0xff] %v530_v33  ;;  %v522_v35 = vmul.f32 %v990_v27, %v513_v34 }
 0x166   : > { %v531_v36 = vadd.f32 %v991_v29, %v522_v35 }
 0x168   : > { %533 = vst [vmem:[#allocation3 + $0x8] sm:$0xff] %v531_v36 }
 0x169 PF: > { %v548_v37 = vld [vmem:[%s1891_s1 + $0x8] sm:$0xff]  ;;  %v550_v38 = vld [vmem:[%s1891_s1 + $0x18] sm:$0xff]  ;;  %v547_v39 = vld [vmem:[%s1891_s1] sm:$0xff]  ;;  %v1500_v44 = vmov 0.0   ;;  %p993_p4 = scmp.ne.s32.totalorder %s1473_s11, 1 }
 0x16a   : > { %v1042_v40 = vpack.c.bf16 %v550_v38, %v548_v37  ;;  %v549_v41 = vld [vmem:[%s1891_s1 + $0x10] sm:$0xff]  ;;  %v552_v42 = vld [vmem:[%s1891_s1 + $0x28] sm:$0xff]  ;;  %v554_v43 = vld [vmem:[%s1891_s1 + $0x38] sm:$0xff]  ;;  %655 = vmatprep.mubr.f32.mxu0 %v1500_v44 }
 0x16b   : > { %v1044_v45 = vpack.c.bf16 %v549_v41, %v547_v39  ;;  %v1046_v46 = vpack.c.bf16 %v554_v43, %v552_v42  ;;  %v551_v47 = vld [vmem:[%s1891_s1 + $0x20] sm:$0xff]  ;;  %v553_v48 = vld [vmem:[%s1891_s1 + $0x30] sm:$0xff]  ;;  %v556_v49 = vld [vmem:[%s1891_s1 + $0x48] sm:$0xff] }
 0x16c   : > { %1043 = vmatprep.subr.bf16.mxu0 %v1042_v40  ;;  %v558_v50 = vld [vmem:[%s1891_s1 + $0x58] sm:$0xff]  ;;  %v1048_v51 = vpack.c.bf16 %v553_v48, %v551_v47  ;;  %v555_v53 = vld [vmem:[%s1891_s1 + $0x40] sm:$0xff]  ;;  %v557_v54 = vld [vmem:[%s1891_s1 + $0x50] sm:$0xff] }
 0x16d   : > { %1045 = vmatpush1.bf16.msra.mxu0 %v1044_v45  ;;  %v1050_v52 = vpack.c.bf16 %v558_v50, %v556_v49  ;;  %v560_v55 = vld [vmem:[%s1891_s1 + $0x68] sm:$0xff]  ;;  %v562_v56 = vld [vmem:[%s1891_s1 + $0x78] sm:$0xff]  ;;  %v1052_v57 = vpack.c.bf16 %v557_v54, %v555_v53  ;;  %v559_v59 = vld [vmem:[%s1891_s1 + $0x60] sm:$0xff] }
 0x16e   : > { %1047 = vmatprep.subr.bf16.mxu0 %v1046_v46  ;;  %v1054_v58 = vpack.c.bf16 %v562_v56, %v560_v55  ;;  %v561_v60 = vld [vmem:[%s1891_s1 + $0x70] sm:$0xff]  ;;  %v564_v61 = vld [vmem:[%s1891_s1 + $0x88] sm:$0xff]  ;;  %v566_v62 = vld [vmem:[%s1891_s1 + $0x98] sm:$0xff] }
 0x16f   : > { %v563_v63 = vld [vmem:[%s1891_s1 + $0x80] sm:$0xff]  ;;  %v565_v0 = vld [vmem:[%s1891_s1 + $0x90] sm:$0xff]  ;;  %v691_v2 = vld [vmem:[%s1897_s3 + $0x88] sm:$0xff]  ;;  %v1056_v3 = vpack.c.bf16 %v561_v60, %v559_v59  ;;  %v1058_v9 = vpack.c.bf16 %v566_v62, %v564_v61 }
 0x170   : > { %v690_v1 = vld [vmem:[%s1897_s3 + $0x80] sm:$0xff]  ;;  %v568_v4 = vld [vmem:[%s1891_s1 + $0xa8] sm:$0xff]  ;;  %v692_v8 = vld [vmem:[%s1897_s3 + $0x90] sm:$0xff]  ;;  %v1060_v19 = vpack.c.bf16 %v565_v0, %v563_v63 }
 0x171   : > { %1049 = vmatpush1.bf16.msra.mxu0 %v1048_v51  ;;  %v1074_v5 = vpack.c.bf16 %v691_v2, %v690_v1  ;;  %v674_v6 = vld [vmem:[%s1897_s3] sm:$0xff]  ;;  %v675_v7 = vld [vmem:[%s1897_s3 + $0x8] sm:$0xff]  ;;  %v693_v11 = vld [vmem:[%s1897_s3 + $0x98] sm:$0xff] }
 0x172   : > { %1051 = vmatprep.subr.bf16.mxu0 %v1050_v52  ;;  %v1076_v10 = vpack.c.bf16 %v675_v7, %v674_v6  ;;  %v676_v12 = vld [vmem:[%s1897_s3 + $0x10] sm:$0xff]  ;;  %v677_v13 = vld [vmem:[%s1897_s3 + $0x18] sm:$0xff]  ;;  %v1078_v15 = vpack.c.bf16 %v693_v11, %v692_v8  ;;  %v694_v16 = vld [vmem:[%s1897_s3 + $0xa0] sm:$0xff] }
 0x173   : > { %v570_v14 = vld [vmem:[%s1891_s1 + $0xb8] sm:$0xff]  ;;  %1075 = vmatprep.subr.bf16.mxu1 %v1074_v5  ;;  %v695_v17 = vld [vmem:[%s1897_s3 + $0xa8] sm:$0xff]  ;;  %v1080_v18 = vpack.c.bf16 %v677_v13, %v676_v12  ;;  %v567_v20 = vld [vmem:[%s1891_s1 + $0xa0] sm:$0xff] }
 0x174   : > { %1077 = vmatpush3.bf16.msra.mxu1 %v1076_v10  ;;  %v1082_v21 = vpack.c.bf16 %v695_v17, %v694_v16  ;;  %v678_v22 = vld [vmem:[%s1897_s3 + $0x20] sm:$0xff]  ;;  %v679_v23 = vld [vmem:[%s1897_s3 + $0x28] sm:$0xff]  ;;  %v1062_v24 = vpack.c.bf16 %v570_v14, %v568_v4  ;;  %v569_v25 = vld [vmem:[%s1891_s1 + $0xb0] sm:$0xff] }
 0x175   : > { %1053 = vmatpush1.bf16.msra.mxu0 %v1052_v57  ;;  %1079 = vmatprep.subr.bf16.mxu1 %v1078_v15  ;;  %v696_v26 = vld [vmem:[%s1897_s3 + $0xb0] sm:$0xff]  ;;  %v697_v27 = vld [vmem:[%s1897_s3 + $0xb8] sm:$0xff]  ;;  %v572_v28 = vld [vmem:[%s1891_s1 + $0xc8] sm:$0xff]  ;;  %v1084_v30 = vpack.c.bf16 %v679_v23, %v678_v22  ;;  %v1064_v31 = vpack.c.bf16 %v569_v25, %v567_v20 }
 0x176   : > { %1055 = vmatprep.subr.bf16.mxu0 %v1054_v58  ;;  %v574_v29 = vld [vmem:[%s1891_s1 + $0xd8] sm:$0xff]  ;;  %v571_v32 = vld [vmem:[%s1891_s1 + $0xc0] sm:$0xff]  ;;  %v1086_v33 = vpack.c.bf16 %v697_v27, %v696_v26  ;;  %v680_v34 = vld [vmem:[%s1897_s3 + $0x30] sm:$0xff] }
 0x177   : > { %v681_v35 = vld [vmem:[%s1897_s3 + $0x38] sm:$0xff]  ;;  %v1066_v36 = vpack.c.bf16 %v574_v29, %v572_v28  ;;  %v573_v37 = vld [vmem:[%s1891_s1 + $0xd0] sm:$0xff]  ;;  %v698_v38 = vld [vmem:[%s1897_s3 + $0xc0] sm:$0xff] }
 0x178   : > { %1081 = vmatpush3.bf16.msra.mxu1 %v1080_v18  ;;  %v699_v39 = vld [vmem:[%s1897_s3 + $0xc8] sm:$0xff]  ;;  %v578_v41 = vld [vmem:[%s1891_s1 + $0xf8] sm:$0xff]  ;;  %v1088_v42 = vpack.c.bf16 %v681_v35, %v680_v34  ;;  %v1068_v43 = vpack.c.bf16 %v573_v37, %v571_v32  ;;  %v575_v45 = vld [vmem:[%s1891_s1 + $0xe0] sm:$0xff] }
 0x179   : > { %1057 = vmatpush1.bf16.msra.mxu0 %v1056_v3  ;;  %1083 = vmatprep.subr.bf16.mxu1 %v1082_v21  ;;  %v576_v40 = vld [vmem:[%s1891_s1 + $0xe8] sm:$0xff]  ;;  %v1090_v46 = vpack.c.bf16 %v699_v39, %v698_v38  ;;  %v682_v47 = vld [vmem:[%s1897_s3 + $0x40] sm:$0xff]  ;;  %v577_v50 = vld [vmem:[%s1891_s1 + $0xf0] sm:$0xff] }
 0x17a   : > { %1059 = vmatprep.subr.bf16.mxu0 %v1058_v9  ;;  %v683_v48 = vld [vmem:[%s1897_s3 + $0x48] sm:$0xff]  ;;  %v1070_v49 = vpack.c.bf16 %v578_v41, %v576_v40  ;;  %v700_v51 = vld [vmem:[%s1897_s3 + $0xd0] sm:$0xff]  ;;  %v701_v52 = vld [vmem:[%s1897_s3 + $0xd8] sm:$0xff]  ;;  %v1072_v54 = vpack.c.bf16 %v577_v50, %v575_v45  ;;  %v581_v9 = vlaneseq }
 0x17b   : > { %v1092_v53 = vpack.c.bf16 %v683_v48, %v682_v47  ;;  %v1094_v55 = vpack.c.bf16 %v701_v52, %v700_v51  ;;  %v684_v56 = vld [vmem:[%s1897_s3 + $0x50] sm:$0xff]  ;;  %v685_v57 = vld [vmem:[%s1897_s3 + $0x58] sm:$0xff]  ;;  %v702_v58 = vld [vmem:[%s1897_s3 + $0xe0] sm:$0xff] }
 0x17c   : > { %1085 = vmatpush3.bf16.msra.mxu1 %v1084_v30  ;;  %v703_v59 = vld [vmem:[%s1897_s3 + $0xe8] sm:$0xff]  ;;  %v1096_v60 = vpack.c.bf16 %v685_v57, %v684_v56  ;;  %v545_v61 = vld [vmem:[#allocation3] sm:$0xff]  ;;  %v546_v63 = vld [vmem:[#allocation3 + $0x8] sm:$0xff]  ;;  %v582_v10 = vshrl.u32 %v581_v9, 7 }
 0x17d   : > { %1061 = vmatpush1.bf16.msra.mxu0 %v1060_v19  ;;  %1087 = vmatprep.subr.bf16.mxu1 %v1086_v33  ;;  %v1098_v62 = vpack.c.bf16 %v703_v59, %v702_v58  ;;  %v686_v0 = vld [vmem:[%s1897_s3 + $0x60] sm:$0xff]  ;;  %v687_v1 = vld [vmem:[%s1897_s3 + $0x68] sm:$0xff]  ;;  %v704_v3 = vld [vmem:[%s1897_s3 + $0xf0] sm:$0xff] }
 0x17e   : > { %1063 = vmatprep.subr.bf16.mxu0 %v1062_v24  ;;  %v1100_v2 = vpack.c.bf16 %v687_v1, %v686_v0  ;;  %v705_v4 = vld [vmem:[%s1897_s3 + $0xf8] sm:$0xff]  ;;  %v688_v6 = vld [vmem:[%s1897_s3 + $0x70] sm:$0xff]  ;;  %v583_v11 = vsub.s32 0, %v582_v10  ;;  %v587_v12 = vsub.s32 1, %v582_v10  ;;  %v672_v28 = vld [vmem:[#allocation2] sm:$0xff] }
 0x17f   : > { %v1102_v5 = vpack.c.bf16 %v705_v4, %v704_v3  ;;  %v689_v7 = vld [vmem:[%s1897_s3 + $0x78] sm:$0xff]  ;;  %v673_v33 = vld [vmem:[#allocation2 + $0x8] sm:$0xff] }
 0x180   : > { %1089 = vmatpush3.bf16.msra.mxu1 %v1088_v42  ;;  %v1104_v8 = vpack.c.bf16 %v689_v7, %v688_v6 }
 0x181   : > { %1065 = vmatpush1.bf16.msra.mxu0 %v1064_v31  ;;  %1091 = vmatprep.subr.bf16.mxu1 %v1090_v46 }
 0x182   : > { %1067 = vmatprep.subr.bf16.mxu0 %v1066_v36 }
 0x184   : > { %1093 = vmatpush3.bf16.msra.mxu1 %v1092_v53 }
 0x185   : > { %1069 = vmatpush1.bf16.msra.mxu0 %v1068_v43  ;;  %1095 = vmatprep.subr.bf16.mxu1 %v1094_v55 }
 0x186   : > { %1071 = vmatprep.subr.bf16.mxu0 %v1070_v49 }
 0x188   : > { %1097 = vmatpush3.bf16.msra.mxu1 %v1096_v60 }
 0x189   : > { %1073 = vmatpush1.bf16.msra.mxu0 %v1072_v54  ;;  %1099 = vmatprep.subr.bf16.mxu1 %v1098_v62 }
 0x18c   : > { %656 = vmatmul.mubr.f32.vlgmr.msra.gmra.mrb[0].mxu0 %v545_v61  ;;  %1101 = vmatpush3.bf16.msra.mxu1 %v1100_v2 }
 0x18d   : > { %661 = vmatprep.mubr.f32.mxu0 %v1500_v44  ;;  %1103 = vmatprep.subr.bf16.mxu1 %v1102_v5  ;;  %v579_v44 = vld [vmem:[%s473_s21] sm:$0x3] }
 0x18e   : > { %v584_v13 = vrot.slane %v579_v44, %v583_v11  ;;  %v588_v14 = vrot.slane %v579_v44, %v587_v12 }
 0x190   : > { %662 = vmatmul.mubr.f32.gmra.mrb[2].mxu0 %v546_v63  ;;  %1105 = vmatpush3.bf16.msra.mxu1 %v1104_v8 }
 0x25f   : > { %v657_v15 = vpop.f32.mrb[0].mxu0 }
 0x260   : > { %v658_v16 = vadd.f32 %v657_v15, %v584_v13  ;;  %v659_v17 = vpop.f32.mrb[1].mxu0 }
 0x261   : > { %v660_v18 = vadd.f32 %v659_v17, %v588_v14 }
 0x262   : > { %v668_v21 = vmax.f32 %v658_v16, 0.0 }
 0x263   : > { %v663_v19 = vpop.f32.mrb[2].mxu0  ;;  %v669_v20 = vmax.f32 %v660_v18, 0.0 }
 0x264   : > { %v664_v22 = vadd.f32 %v663_v19, %v584_v13  ;;  %v665_v23 = vpop.f32.mrb[3].mxu0 }
 0x265   : > { %v666_v24 = vadd.f32 %v665_v23, %v588_v14  ;;  %770 = vmatprep.mubr.f32.mxu1 %v669_v20 }
 0x266   : > { %771 = vmatmul.mubr.f32.vlgmr.msra.gmra.mrb[0].mxu1 %v668_v21  ;;  %v670_v26 = vmax.f32 %v664_v22, 0.0 }
 0x267   : > { %v671_v25 = vmax.f32 %v666_v24, 0.0 }
 0x269   : > { %775 = vmatprep.mubr.f32.mxu1 %v671_v25 }
 0x26a   : > { %776 = vmatmul.mubr.f32.gmra.mrb[2].mxu1 %v670_v26 }
 0x339   : > { %v1036_v27 = vpop.f32.mrb[0].mxu1 }
 0x33a   : > { %v1037_v29 = vpop.f32.mrb[1].mxu1 }
 0x33b   : > { %v1038_v30 = vadd.f32 %v1037_v29, %v1036_v27 }
 0x33d   : > { %v781_v31 = vadd.f32 %v1038_v30, %v672_v28  ;;  %v1039_v32 = vpop.f32.mrb[2].mxu1  ;;  %788 = sbr.rel (%p993_p4) target bundleno = 844 (0x34c), region = 76 }
 0x33e   : > { %v1040_v34 = vpop.f32.mrb[3].mxu1 }
 0x33f   : > { %783 = vst [vmem:[#allocation2] sm:$0xff] %v781_v31  ;;  %v1041_v35 = vadd.f32 %v1040_v34, %v1039_v32 }
 0x341   : > { %v782_v36 = vadd.f32 %v1041_v35, %v673_v33 }
 0x343   : > { %784 = vst [vmem:[#allocation2 + $0x8] sm:$0xff] %v782_v36 }
 0x346   : > { %v789_v37 = vld [vmem:[#allocation2] sm:$0xff] }
 0x347   : > { %791 = vst [vmem:[%s1911_s14] sm:$0xff] %v789_v37 }
 0x34a   : > { %v790_v38 = vld [vmem:[#allocation2 + $0x8] sm:$0xff] }
 0x34b   : > { %792 = vst [vmem:[%s1911_s14 + $0x8] sm:$0xff] %v790_v38 }
 0x34c PF: > { %s2138_s8 = sld [smem:[#allocation20_spill]]  ;;  %s2139_s27 = sld [smem:[#allocation27_spill]] }
 0x34d   : > { %s2140_s16 = sld [smem:[#allocation34_spill]]  ;;  %s807_s24 = sshll.u32 %s1911_s14, 4  ;;  %s2004_s24 = int_to_ptr.vmem [resolvable:$true] %s807_s24 }
 0x34e   : > { %s794_s11 = scalar_lea.sflag [#allocation6], %s1873_s10  ;;  %s1355_s12 = scalar_lea.vmem %s2004_s24, 256 }
 0x34f   : > { %p1356_p2 = scmp.ne.s32.totalorder %s2004_s24, %s1355_s12  ;;  %s1501_s17 = smov [#allocation12]  }
 0x350   : > { %s1359_s21 = sshll.u32 %s1501_s17, 4  ;;  %s1360_s21 = int_to_ptr.vmem [resolvable:$false] %s1359_s21 }
 0x351   : > { %s1361_s22 = scalar_lea.vmem %s1360_s21, 512  ;;  %p1362_p8 = scmp.lt.s32.totalorder %s2004_s24, %s1360_s21 }
 0x352   : > { %s1003_s15 = sshll.u32 %s2138_s8, 8  ;;  %p2141_p10 = scmp.ne.s32.totalorder %s2139_s27, 0 }
 0x353   : > { %s2001_s3 = scalar_lea.hbm %s2140_s16, %s1003_s15  ;;  %p1363_p7 = scmp.lt.s32.totalorder %s1361_s22, %s1355_s12 }
 0x354   : > { %p1357_p12 = pnand %p1356_p2, %p2141_p10 }
 0x355   : > { %p1364_p11 = por %p1363_p7, %p1362_p8 }
 0x356   : > { %p1358_p0 = pneg %p1357_p12 }
 0x358   : > { %p1365_p5 = pnand %p1364_p11, %p1358_p0 }
 0x35a   : > { %1368 = shalt.err (!%p1365_p5)
}
 0x35b   : > { %s1369_s14 = scalar_lea.hbm %s2001_s3, 256  ;;  %s1373_s18 = scalar_lea.hbm %s2140_s16, 512 }
 0x35c   : > { %p1370_p6 = scmp.ne.s32.totalorder %s2001_s3, %s1369_s14  ;;  %p1374_p3 = scmp.lt.u32.totalorder %s2001_s3, %s2140_s16 }
 0x35d   : > { %p1375_p9 = scmp.lt.u32.totalorder %s1373_s18, %s1369_s14  ;;  %p1377_p2 = scmp.lt.u32.totalorder %s1369_s14, %s2001_s3 }
 0x35e   : > { %p1371_p13 = pnand %p1370_p6, %p2141_p10 }
 0x35f   : > { %p1376_p4 = por %p1375_p9, %p1374_p3 }
 0x360   : > { %p1372_p1 = pneg %p1371_p13 }
 0x361   : > { %p1378_p12 = por %p1377_p2, %p1376_p4 }
 0x363   : > { %p1379_p0 = pnand %p1378_p12, %p1372_p1 }
 0x365   : > { %1382 = shalt.err (!%p1379_p0)
}
 0x366   : > { %s1502_s19 = smov 128   ;;  %s1503_s20 = smov 8  }
 0x367   : > { %1114 = dma.vmem_to_hbm [thread:$0]  (%p2141_p10), %s2004_s24, 256, %s2001_s3, %s794_s11, %s1502_s19, %s1502_s19, %s1503_s20  }
 0x368 PF: > { %s2142_s2 = sld [smem:[#allocation22_spill]]  ;;  %s2143_s4 = sld [smem:[#allocation18_spill]] }
 0x369   : > { %s2144_s8 = sld [smem:[#allocation28_spill]] }
 0x36e   : > { %p1134_p8 = scmp.ge.s32.totalorder %s2142_s2, 2  ;;  %s822_s15 = sand.u32 1, %s2143_s4  }
 0x36f   : > { %p2145_p7 = scmp.ne.s32.totalorder %s2144_s8, 0  ;;  %s823_s23 = scalar_lea.sflag [#allocation6], %s822_s15 }
 0x371   : > { %p1130_p11 = pnand %p1134_p8, %p2145_p7 }
 0x373   : > { %1444 = dma.done.wait (!%p1130_p11), %s823_s23, 256  }
 0x374   : > { %1446 = vsyncadd (!%p1130_p11), %s823_s23, 4294967040  ;;  %s30_s15 = sadd.s32 1, %s2142_s2   ;;  %s2146_s1 = sld [smem:[#allocation25_spill]] }
 0x375   : > { %p27_p5 = scmp.ge.s32.totalorder %s30_s15, 6   ;;  %s2147_s10 = sld [smem:[#allocation19_spill]] }
 0x376   : > { %s2148_s3 = sld [smem:[#allocation26_spill]]  ;;  %s2149_s12 = sld [smem:[#allocation21_spill]] }
 0x377   : > { %s2150_s24 = sld [smem:[#allocation23_spill]]  ;;  %s2151_s14 = sld [smem:[#allocation24_spill]] }
 0x378   : > { %s2152_s27 = smov %s1453_s28  ;;  %s2153_s28 = smov %s1457_s29 }
 0x379   : > { %s2155_s30 = smov %s1465_s9  ;;  %s2158_s11 = smov %s1481_s13 }
 0x37a   : > { %s2154_s29 = smov %s2146_s1  ;;  %29 = sbr.rel (!%p27_p5) target bundleno = 20 (0x14), region = 145 }
 0x37b   : > { %s2156_s9 = smov %s2147_s10 }
 0x37c   : > { %s2157_s10 = smov %s2148_s3 }
 0x37d   : > { %s2159_s13 = smov %s2150_s24 }
 0x381   :  { %828 = vsyncpa [#allocation5], 1 }
 0x382   :  { %830 = vsyncpa [#allocation5 + $0x1], 1 }
 0x383   :  { %831 = vsyncpa [#allocation8], 1 }
 0x384   :  { %833 = vsyncpa [#allocation8 + $0x1], 1 }
 0x385   :  { %834 = vsyncpa [#allocation11], 1 }
 0x386   :  { %836 = vsyncpa [#allocation11 + $0x1], 1 }
 0x387   :  { %837 = vsyncpa [#allocation6], 1 }
 0x388   :  { %839 = vsyncpa [#allocation6 + $0x1], 1 }

</bundles_post_ra>
